<compile_context>
chip_gen: v7x
topology: tpu7x:2x2x1
jax: 0.10.0
libtpu: 0.0.40
codegen_flags: <defaults>
</compile_context>

<pallas_src>
import jax
import jax.numpy as jnp
from jax.experimental import pallas as pl
from jax.experimental.pallas import tpu as pltpu


def _round_up(n: int, m: int) -> int:
    return ((n + m - 1) // m) * m


def _cdiv(a: int, b: int) -> int:
    return (a + b - 1) // b


def _make_fe_kernel(alpha: float, beta: float, H: int, W: int):
    """Returns a Pallas kernel body with alpha/beta/H/W baked in as constants."""
    HW = H * W
    c0 = 1.0 + beta - 4.0 * alpha  # folded center coefficient: (1+beta) - 4*alpha

    # Nonnegative static lane-roll amounts (roll(x, s)[k] == x[k - s], wrapping).
    sh_up = W % HW            # u[i-1, j]  == u_flat[k - W]
    sh_down = (HW - W) % HW   # u[i+1, j]  == u_flat[k + W]
    sh_left = 1 % HW          # u[i, j-1]  == u_flat[k - 1]
    sh_right = (HW - 1) % HW  # u[i, j+1]  == u_flat[k + 1]

    def kernel(x_ref, o_ref):
        # In-kernel upcast (free VPU work hidden under DMA); refs stay in the
        # caller's dtype so the wrapper never emits cast passes over HBM.
        u = x_ref[...].astype(jnp.float32)          # (TB, HW)

        # Edge masks from a lane iota: i = k // W, j = k % W.
        lane = jax.lax.broadcasted_iota(jnp.int32, (1, HW), 1)
        col = lane % W
        is_top = lane < W              # i == 0
        is_bot = lane >= HW - W        # i == H - 1
        is_left = col == 0             # j == 0
        is_right = col == W - 1        # j == W - 1

        # XLU lane rotations + replication-pad edge fixes (also kill wrap-around).
        # Accumulate immediately to keep the number of live block-sized f32
        # temporaries (and hence VMEM scratch) small even for large blocks.
        acc = jnp.where(is_top, u, pltpu.roll(u, sh_up, axis=1))
        acc = acc + jnp.where(is_bot, u, pltpu.roll(u, sh_down, axis=1))
        acc = acc + jnp.where(is_left, u, pltpu.roll(u, sh_left, axis=1))
        acc = acc + jnp.where(is_right, u, pltpu.roll(u, sh_right, axis=1))

        # alpha*(s - 4u) + (1+beta)*u - beta*u^2, with -4*alpha folded into c0.
        o_ref[...] = (alpha * acc + c0 * u - beta * (u * u)).astype(o_ref.dtype)

    return kernel


def fe_forward(x: jax.Array, dt: float, c: float, r: float, h: float,
               *, block_bytes: int = 4 << 20) -> jax.Array:
    """Pallas TPU equivalent of FE(dt, c, r, h).forward(x). x is NCHW with C == 1."""
    assert x.ndim == 4 and x.shape[1] == 1, "conv weight [1,1,3,3] implies C == 1"
    N, C, H, W = x.shape
    HW = H * W
    alpha = float(dt * c / (h ** 2))
    beta = float(r * dt)

    dtype = x.dtype
    itemsize = jnp.dtype(dtype).itemsize
    xf = x.reshape(N, HW)  # row-major contiguous -> free reshape; lane axis = H*W

    # ---------------- block sizing ----------------
    # Budget per block (account for f32 compute temporaries), multiple of 8
    # sublanes, hard cap 4096 images/block.
    img_bytes = HW * max(itemsize, 4)
    tb_budget = max(8, min(4096, (block_bytes // max(img_bytes, 1)) // 8 * 8))

    MIN_STEPS = 8  # keep >= ~8 grid steps when N allows: amortizes per-step
                   # overhead while letting v7x's 2 TensorCores split the
                   # "parallel" grid axis evenly.
    if N <= 8:
        tb = N  # full-extent block along the sublane axis (allowed for any N)
    else:
        tb = min(tb_budget, max(8, _round_up(_cdiv(N, MIN_STEPS), 8)))
        g = _cdiv(N, tb)
        if 1 < g < MIN_STEPS and g % 2 == 1:
            # Nudge tb upward so the step count becomes even (megacore balance).
            for cand in range(tb + 8, tb_budget + 1, 8):
                if _cdiv(N, cand) % 2 == 0:
                    tb = cand
                    break
    G = _cdiv(N, tb)
    # TODO(synk): very large single images (H*W*itemsize >> block budget) would
    # need spatial row-tiling with a 1-row halo; not required for this module's
    # grids (HW is small and lane-dense here).
    # TODO(synk): if HW is not a multiple of 128, stores fall back to masked
    # vst.msk; packing several images per sublane row would keep them lane-dense.

    # Explicit scoped-VMEM budget: double-buffered in+out blocks + f32 temps.
    blk_io = tb * HW * itemsize
    blk_f32 = tb * HW * 4
    vmem_limit = int(4 * blk_io + 6 * blk_f32 + (2 << 20))
    vmem_limit = min(max(vmem_limit, 32 << 20), 64 << 20)

    kernel = _make_fe_kernel(alpha, beta, H, W)

    out = pl.pallas_call(
        kernel,
        out_shape=jax.ShapeDtypeStruct((N, HW), dtype),
        grid_spec=pltpu.PrefetchScalarGridSpec(
            num_scalar_prefetch=0,
            grid=(G,),
            in_specs=[pl.BlockSpec((tb, HW), lambda i: (i, 0))],   # x images
            out_specs=pl.BlockSpec((tb, HW), lambda i: (i, 0)),
        ),
        compiler_params=pltpu.CompilerParams(
            dimension_semantics=("parallel",),
            vmem_limit_bytes=vmem_limit),
        cost_estimate=pl.CostEstimate(
            flops=10 * N * HW,
            transcendentals=0,
            bytes_accessed=2 * N * HW * itemsize),
    )(xf)

    return out.reshape(N, C, H, W)


def _reference(x, dt, c, r, h):
    """Pure-JAX reference matching the PyTorch FE.forward."""
    alpha = dt * c / (h ** 2)
    beta = r * dt
    u_pad = jnp.pad(x, ((0, 0), (0, 0), (1, 1), (1, 1)), mode="edge")
    delta = jnp.array([[[[0.0, 1.0, 0.0],
                         [1.0, -4.0, 1.0],
                         [0.0, 1.0, 0.0]]]], dtype=x.dtype)
    z = jax.lax.conv_general_dilated(
        u_pad, delta, window_strides=(1, 1), padding="VALID",
        dimension_numbers=("NCHW", "OIHW", "NCHW"))
    return alpha * z + (1 + beta) * x - beta * x ** 2


if __name__ == "__main__":
    # FDM parameters (deterministic, init-time constants of the module).
    dt, c, r, h = 0.01, 1.5, 0.5, 0.1

    # Small primary test (single full-extent block, G = 1).
    x = jax.random.normal(jax.random.PRNGKey(0), (2, 1, 16, 16), dtype=jnp.float32)
    out = jax.block_until_ready(fe_forward(x, dt, c, r, h))
    ref = _reference(x, dt, c, r, h)
    assert out.shape == ref.shape and out.dtype == ref.dtype
    assert jnp.allclose(out, ref, atol=1e-5, rtol=1e-5), (
        float(jnp.max(jnp.abs(out - ref))))

    # Larger batch with N % tb != 0: exercises the multi-step grid, even step
    # count for megacore balance, and the Pallas-handled partial tail block
    # (no wrapper-side pad/slice passes).
    x2 = jax.random.normal(jax.random.PRNGKey(1), (1037, 1, 16, 16), dtype=jnp.float32)
    out2 = jax.block_until_ready(fe_forward(x2, dt, c, r, h))
    ref2 = _reference(x2, dt, c, r, h)
    assert out2.shape == ref2.shape and out2.dtype == ref2.dtype
    assert jnp.allclose(out2, ref2, atol=1e-5, rtol=1e-5), (
        float(jnp.max(jnp.abs(out2 - ref2))))

    print("KERNEL_OK")
</pallas_src>

<mosaic_0001>
module attributes {stable_mosaic.version = 11 : i64} {
  func.func @kernel(%arg0: i32, %arg1: memref<2x256xf32, #tpu.memory_space<vmem>>, %arg2: memref<2x256xf32, #tpu.memory_space<vmem>>) attributes {dimension_semantics = [#tpu.dimension_semantics<parallel>], iteration_bounds = array<i64: 1>, scalar_prefetch = 0 : i64, scratch_operands = 0 : i64, tpu.core_type = #tpu.core_type<tc>, window_params = [{transform_indices = @transform_0, window_bounds = array<i64: 2, 256>}, {transform_indices = @transform_1, window_bounds = array<i64: 2, 256>}]} {
    %c0 = arith.constant 0 : index
    %c0_0 = arith.constant 0 : index
    %0 = vector.load %arg1[%c0, %c0_0] : memref<2x256xf32, #tpu.memory_space<vmem>>, vector<2x256xf32>
    %1 = tpu.iota {dimensions = array<i32: 1>} : vector<1x256xi32>
    %c16_i32 = arith.constant 16 : i32
    %c0_i32 = arith.constant 0 : i32
    %2 = arith.cmpi eq, %c16_i32, %c0_i32 : i32
    %c1_i32 = arith.constant 1 : i32
    %3 = arith.select %2, %c1_i32, %c16_i32 : i32
    %4 = vector.broadcast %3 : i32 to vector<1x256xi32>
    %5 = arith.remsi %1, %4 : vector<1x256xi32>
    %c0_i32_1 = arith.constant 0 : i32
    %6 = vector.broadcast %c0_i32_1 : i32 to vector<1x256xi32>
    %7 = arith.cmpi ne, %5, %6 : vector<1x256xi32>
    %c0_i32_2 = arith.constant 0 : i32
    %8 = vector.broadcast %c0_i32_2 : i32 to vector<1x256xi32>
    %9 = arith.cmpi slt, %5, %8 : vector<1x256xi32>
    %c0_i32_3 = arith.constant 0 : i32
    %10 = arith.cmpi slt, %3, %c0_i32_3 : i32
    %11 = vector.broadcast %10 : i1 to vector<1x256xi1>
    %12 = vector.broadcast %11 : vector<1x256xi1> to vector<1x256xi1>
    %13 = arith.xori %9, %12 : vector<1x256xi1>
    %14 = arith.andi %13, %7 : vector<1x256xi1>
    %15 = vector.broadcast %3 : i32 to vector<1x256xi32>
    %16 = arith.addi %5, %15 : vector<1x256xi32>
    %17 = arith.select %14, %16, %5 : vector<1x256xi1>, vector<1x256xi32>
    %c16_i32_4 = arith.constant 16 : i32
    %18 = vector.broadcast %c16_i32_4 : i32 to vector<1x256xi32>
    %19 = arith.cmpi slt, %1, %18 : vector<1x256xi32>
    %c240_i32 = arith.constant 240 : i32
    %20 = vector.broadcast %c240_i32 : i32 to vector<1x256xi32>
    %21 = arith.cmpi sge, %1, %20 : vector<1x256xi32>
    %c0_i32_5 = arith.constant 0 : i32
    %22 = vector.broadcast %c0_i32_5 : i32 to vector<1x256xi32>
    %23 = arith.cmpi eq, %17, %22 : vector<1x256xi32>
    %c15_i32 = arith.constant 15 : i32
    %24 = vector.broadcast %c15_i32 : i32 to vector<1x256xi32>
    %25 = arith.cmpi eq, %17, %24 : vector<1x256xi32>
    %c16_i32_6 = arith.constant 16 : i32
    %26 = tpu.dynamic_rotate %0 by %c16_i32_6 dim 1 : vector<2x256xf32>, i32 -> vector<2x256xf32>
    %27 = vector.shape_cast %19 : vector<1x256xi1> to vector<1x256xi1>
    %28 = vector.broadcast %27 : vector<1x256xi1> to vector<2x256xi1>
    %29 = arith.select %28, %0, %26 : vector<2x256xi1>, vector<2x256xf32>
    %c240_i32_7 = arith.constant 240 : i32
    %30 = tpu.dynamic_rotate %0 by %c240_i32_7 dim 1 : vector<2x256xf32>, i32 -> vector<2x256xf32>
    %31 = vector.shape_cast %21 : vector<1x256xi1> to vector<1x256xi1>
    %32 = vector.broadcast %31 : vector<1x256xi1> to vector<2x256xi1>
    %33 = arith.select %32, %0, %30 : vector<2x256xi1>, vector<2x256xf32>
    %34 = arith.addf %29, %33 : vector<2x256xf32>
    %c1_i32_8 = arith.constant 1 : i32
    %35 = tpu.dynamic_rotate %0 by %c1_i32_8 dim 1 : vector<2x256xf32>, i32 -> vector<2x256xf32>
    %36 = vector.shape_cast %23 : vector<1x256xi1> to vector<1x256xi1>
    %37 = vector.broadcast %36 : vector<1x256xi1> to vector<2x256xi1>
    %38 = arith.select %37, %0, %35 : vector<2x256xi1>, vector<2x256xf32>
    %39 = arith.addf %34, %38 : vector<2x256xf32>
    %c255_i32 = arith.constant 255 : i32
    %40 = tpu.dynamic_rotate %0 by %c255_i32 dim 1 : vector<2x256xf32>, i32 -> vector<2x256xf32>
    %41 = vector.shape_cast %25 : vector<1x256xi1> to vector<1x256xi1>
    %42 = vector.broadcast %41 : vector<1x256xi1> to vector<2x256xi1>
    %43 = arith.select %42, %0, %40 : vector<2x256xi1>, vector<2x256xf32>
    %44 = arith.addf %39, %43 : vector<2x256xf32>
    %cst = arith.constant 1.500000e+00 : f32
    %45 = vector.broadcast %cst : f32 to vector<2x256xf32>
    %46 = arith.mulf %45, %44 : vector<2x256xf32>
    %cst_9 = arith.constant -4.995000e+00 : f32
    %47 = vector.broadcast %cst_9 : f32 to vector<2x256xf32>
    %48 = arith.mulf %47, %0 : vector<2x256xf32>
    %49 = arith.addf %46, %48 : vector<2x256xf32>
    %50 = arith.mulf %0, %0 : vector<2x256xf32>
    %cst_10 = arith.constant 5.000000e-03 : f32
    %51 = vector.broadcast %cst_10 : f32 to vector<2x256xf32>
    %52 = arith.mulf %51, %50 : vector<2x256xf32>
    %53 = arith.subf %49, %52 : vector<2x256xf32>
    %c0_11 = arith.constant 0 : index
    %c0_12 = arith.constant 0 : index
    %54 = vector.load %arg2[%c0_11, %c0_12] : memref<2x256xf32, #tpu.memory_space<vmem>>, vector<2x256xf32>
    tpu.vector_store %arg2[%c0_11, %c0_12], %53 {strides = array<i32>} : memref<2x256xf32, #tpu.memory_space<vmem>>, vector<2x256xf32>,
    return
  }
  func.func @transform_0(%arg0: i32) -> (i32, i32) {
    %c0_i32 = arith.constant 0 : i32
    %c0_i32_0 = arith.constant 0 : i32
    return %arg0, %c0_i32 : i32, i32
  }
  func.func @transform_1(%arg0: i32) -> (i32, i32) {
    %c0_i32 = arith.constant 0 : i32
    %c0_i32_0 = arith.constant 0 : i32
    return %arg0, %c0_i32 : i32, i32
  }
}

</mosaic_0001>

<bundles_post_ra>
// kernel: tpu_custom_call.1
= control target key start
LH: loop header
LB: loop body
LE: loop exit
PB: predicated region body
PF: predicated region fallthrough
CT: control target
= control target key end

     0   :  { %6 = vsyncpa [#allocation3], 0  ;;  %s296_s0 = inlined_call_operand.hbm [shape: f32[2,256], index: 0, kind: input, shape index: {}]   ;;  %s297_s1 = inlined_call_operand.hbm [shape: f32[2,256], index: 1, kind: output, shape index: {}]  }
   0x1   :  { %7 = vsyncpa [#allocation4], 0  ;;  %s239_s6 = smov [#allocation2]   ;;  %s191_s10 = scalar_lea.hbm %s296_s0, 64 }
   0x2   :  { %s14_s7 = sshll.u32 %s239_s6, 4  ;;  %p192_p0 = scmp.ne.s32.totalorder %s296_s0, %s191_s10  ;;  %s15_s7 = int_to_ptr.vmem [resolvable:$true] %s14_s7 }
   0x3   :  { %p195_p1 = scmp.lt.u32.totalorder %s191_s10, %s296_s0 }
   0x5   :  { %p197_p2 = pnand %p195_p1, %p192_p0 }
   0x7   :  { %200 = shalt.err (!%p197_p2)
}
   0x8   :  { %s201_s15 = scalar_lea.vmem %s15_s7, 64  ;;  %p206_p4 = scmp.lt.s32.totalorder %s15_s7, %s15_s7 }
   0x9   :  { %p202_p3 = scmp.ne.s32.totalorder %s15_s7, %s201_s15  ;;  %p207_p5 = scmp.lt.s32.totalorder %s201_s15, %s201_s15 }
   0xb   :  { %p208_p6 = por %p207_p5, %p206_p4 }
   0xd   :  { %p209_p7 = pnand %p208_p6, %p202_p3 }
   0xf   :  { %212 = shalt.err (!%p209_p7)
}
  0x10   :  { %17 = dma.hbm_to_vmem [thread:$0]  %s296_s0, 64, %s15_s7, [#allocation3]  }
  0x11   :  { %235 = dma.done.wait [#allocation3], 64  }
  0x12   :  { %236 = vsyncadd [#allocation3], 4294967232  ;;  %v22_v0 = vlaneseq  ;;  %v240_v1 = vmov 1983009808   ;;  %v21_v6 = vld [vmem:[#allocation2] sm:$0xf] }
  0x13   :  { %v59_v2 = vunpack.c.l.s4 %v240_v1  ;;  %v127_v8 = vmul.f32 -4.995, %v21_v6  ;;  %v141_v9 = vmul.f32 %v21_v6, %v21_v6  ;;  %s241_s18 = smov 112   ;;  %s242_s19 = smov 16  }
  0x14   :  { %v62_v3 = vshrl.u32 %v22_v0, 7  ;;  %s243_s0 = smov 1   ;;  %s244_s20 = smov 127   ;;  %v23_v14 = vand.u32 127, %v22_v0 }
  0x15   :  { %v60_v4 = vunpack.c.0.s8 %v59_v2  ;;  %v142_v12 = vmul.f32 0.005, %v141_v9  ;;  %s245_s21 = smov [#allocation5]  }
  0x16   :  { %v24_v17 = vadd.s32 128, %v23_v14  ;;  %vm84_vm0 = vcmp.lt.s32.totalorder %v23_v14, 112  ;;  %v29_v21 = vand.u32 15, %v23_v14  ;;  %vm99_vm2 = vcmp.lt.s32.totalorder %v23_v14, 1  ;;  %s174_s22 = sshll.u32 %s245_s21, 4  ;;  %s175_s22 = int_to_ptr.vmem [resolvable:$true] %s174_s22 }
  0x17   :  { %v63_v5 = vsub.s32 %v60_v4, %v62_v3  ;;  %vm49_vm3 = vcmp.lt.s32.totalorder %v23_v14, 16  ;;  %vm114_vm6 = vcmp.lt.s32.totalorder %v23_v14, 127  ;;  %s213_s23 = scalar_lea.vmem %s175_s22, 64  ;;  %p218_p9 = scmp.lt.s32.totalorder %s175_s22, %s175_s22 }
  0x18   :  { %v36_v18 = vand.u32 15, %v24_v17  ;;  %vm52_vm1 = vcmp.ge.s32.totalorder %v24_v17, 240  ;;  %vm273_vm5 = vcmp.eq.s32.totalorder %v29_v21, 0  ;;  %vm55_vm7 = vcmp.eq.s32.totalorder %v29_v21, 15  ;;  %p214_p8 = scmp.ne.s32.totalorder %s175_s22, %s213_s23  ;;  %p219_p10 = scmp.lt.s32.totalorder %s213_s23, %s213_s23 }
  0x19   :  { %v64_v7 = vrot.slane %v21_v6, %v63_v5  ;;  %v135_v11 = vrot.slane %v127_v8, %v63_v5  ;;  %v150_v13 = vrot.slane %v142_v12, %v63_v5 }
  0x1a   :  { %vm269_vm4 = vcmp.eq.s32.totalorder %v36_v18, 0  ;;  %vm56_vm8 = vcmp.eq.s32.totalorder %v36_v18, 15  ;;  %p220_p11 = por %p219_p10, %p218_p9 }
  0x1b   :  { %80 = vrot.lane.b32.xlu1 %v64_v7, %s241_s18  ;;  %68 = vrot.lane.b32.xlu0 %v64_v7, %s242_s19  ;;  %v65_v10 = vcombine.high %v64_v7, %v64_v7  ;;  %v136_v46 = vcombine.high %v135_v11, %v135_v11  ;;  %v151_v51 = vcombine.high %v150_v13, %v150_v13 }
  0x1c   :  { %p221_p12 = pnand %p220_p11, %p214_p8 }
  0x1f   :  { %95 = vrot.lane.b32.xlu0 %v64_v7, %s243_s0  ;;  %82 = vrot.lane.b32.xlu1 %v65_v10, %s241_s18 }
  0x23   :  { %97 = vrot.lane.b32.xlu1 %v65_v10, %s243_s0  ;;  %70 = vrot.lane.b32.xlu0 %v65_v10, %s242_s19 }
  0x27   :  { %112 = vrot.lane.b32.xlu1 %v65_v10, %s244_s20  ;;  %110 = vrot.lane.b32.xlu0 %v64_v7, %s244_s20 }
  0x8d   :  { %v81_v15 = vpop.permute.xlu1 %80  ;;  %v69_v16 = vpop.permute.xlu0 %68 }
  0x91   :  { %v96_v19 = vpop.permute.xlu0 %95  ;;  %v83_v20 = vpop.permute.xlu1 %82 }
  0x92   :  { %v86_v22 = vsel %vm84_vm0, %v83_v20, %v81_v15  ;;  %v85_v32 = vsel %vm84_vm0, %v81_v15, %v83_v20 }
  0x93   :  { %v92_v26 = vsel %vm52_vm1, %v65_v10, %v86_v22 }
  0x95   :  { %v98_v25 = vpop.permute.xlu1 %97  ;;  %v71_v27 = vpop.permute.xlu0 %70 }
  0x96   :  { %v100_v28 = vsel %vm99_vm2, %v96_v19, %v98_v25  ;;  %v101_v29 = vsel %vm99_vm2, %v98_v25, %v96_v19  ;;  %v72_v30 = vsel %vm49_vm3, %v69_v16, %v71_v27  ;;  %v73_v31 = vsel %vm49_vm3, %v71_v27, %v69_v16 }
  0x97   :  { %v107_v33 = vsel %vm269_vm4, %v65_v10, %v100_v28  ;;  %v78_v34 = vsel %vm49_vm3, %v64_v7, %v73_v31  ;;  %v94_v35 = vadd.f32 %v92_v26, %v72_v30  ;;  %v106_v37 = vsel %vm273_vm5, %v64_v7, %v101_v29 }
  0x98   :  { %v93_v36 = vadd.f32 %v85_v32, %v78_v34 }
  0x99   :  { %v109_v38 = vadd.f32 %v107_v33, %v94_v35  ;;  %v113_v39 = vpop.permute.xlu1 %112  ;;  %v111_v40 = vpop.permute.xlu0 %110 }
  0x9a   :  { %v108_v41 = vadd.f32 %v106_v37, %v93_v36  ;;  %v115_v42 = vsel %vm114_vm6, %v111_v40, %v113_v39  ;;  %v116_v43 = vsel %vm114_vm6, %v113_v39, %v111_v40 }
  0x9b   :  { %v121_v44 = vsel %vm55_vm7, %v64_v7, %v115_v42  ;;  %v122_v45 = vsel %vm56_vm8, %v65_v10, %v116_v43 }
  0x9c   :  { %v123_v47 = vadd.f32 %v121_v44, %v108_v41  ;;  %v124_v48 = vadd.f32 %v122_v45, %v109_v38 }
  0x9e   :  { %v125_v49 = vmul.f32 1.5, %v123_v47  ;;  %v126_v50 = vmul.f32 1.5, %v124_v48 }
  0xa0   :  { %v139_v52 = vadd.f32 %v135_v11, %v125_v49  ;;  %v140_v53 = vadd.f32 %v136_v46, %v126_v50 }
  0xa2   :  { %v154_v54 = vsub.f32 %v139_v52, %v150_v13  ;;  %v155_v55 = vsub.f32 %v140_v53, %v151_v51 }
  0xa4   :  { %v158_v56 = vcombine.low %v154_v54, %v155_v55 }
  0xa6   :  { %183 = vst.sshfl [vmem:[#allocation5] sm:$0x33 pattern:$0x76325410] %v158_v56 }
  0xa7   :  { %224 = shalt.err (!%p221_p12)
}
  0xa8   :  { %s225_s26 = scalar_lea.hbm %s297_s1, 64 }
  0xa9   :  { %p226_p13 = scmp.ne.s32.totalorder %s297_s1, %s225_s26  ;;  %p229_p0 = scmp.lt.u32.totalorder %s225_s26, %s297_s1 }
  0xab   :  { %p231_p1 = pnand %p229_p0, %p226_p13 }
  0xad   :  { %234 = shalt.err (!%p231_p1)
}
  0xae   :  { %177 = dma.vmem_to_hbm [thread:$0]  %s175_s22, 64, %s297_s1, [#allocation4]  }
  0xaf   :  { %237 = dma.done.wait [#allocation4], 64  }
  0xb0   :  { %238 = vsyncadd [#allocation4], 4294967232 }
  0xb1   :  { %181 = vsyncpa [#allocation3], 1 }
  0xb2   :  { %182 = vsyncpa [#allocation4], 1 }

</bundles_post_ra>
